<compile_context>
chip_gen: v6e
topology: v6e:2x2x1
jax: 0.10.0
libtpu: 0.0.40
codegen_flags: <defaults>
</compile_context>

<pallas_src>
import math
from functools import partial

import jax
import jax.numpy as jnp
from jax.experimental import pallas as pl
from jax.experimental.pallas import tpu as pltpu

LANES = 128
MAX_TILE_ROWS = 1024               # rows per grid step (HBM-roofline-sized tile)
MAX_TILE_BYTES = 2 * 1024 * 1024   # per-input block cap (safe for v7x scoped VMEM)


def _round_up(x, m):
    return ((x + m - 1) // m) * m


def _cdiv(a, b):
    return -(-a // b)


# ---------------------------------------------------------------------------
# Kernel: per-lane partial sums of (pred - true)^2
# ---------------------------------------------------------------------------
def _sq_err_kernel(pred_ref, true_ref, out_ref, *, tile_rows, rows_total,
                   inner_steps):
    c = pl.program_id(0)           # "parallel" chunk (megacore split on v7x)
    j = pl.program_id(1)           # "arbitrary" reduction sweep over row-tiles

    @pl.when(j == 0)
    def _():
        out_ref[...] = jnp.zeros_like(out_ref)

    # Intended (unclamped) tile index -> global row offset, for tail masking.
    row0 = (c * inner_steps + j) * tile_rows
    row_ids = jax.lax.broadcasted_iota(jnp.int32, out_ref.shape, 0)
    valid = (row0 + row_ids) < rows_total

    d = pred_ref[...].astype(jnp.float32) - true_ref[...].astype(jnp.float32)
    out_ref[...] += jnp.where(valid, d * d, jnp.float32(0.0))


def _sq_err_lane_partials(pred2d, true2d, tile_rows):
    """Streams pred/true once; returns (chunks, tile_rows, lanes) f32 partials."""
    rows, lanes = pred2d.shape
    num_tiles = _cdiv(rows, tile_rows)
    chunks = 2 if num_tiles >= 2 else 1
    inner = _cdiv(num_tiles, chunks)

    def in_map(c, j):
        # Clamp so a possibly-empty trailing step re-reads the last real tile;
        # its contribution is masked to zero inside the kernel.
        return (jnp.minimum(c * inner + j, num_tiles - 1), 0)

    kernel = partial(_sq_err_kernel, tile_rows=tile_rows, rows_total=rows,
                     inner_steps=inner)

    return pl.pallas_call(
        kernel,
        out_shape=jax.ShapeDtypeStruct((chunks, tile_rows, lanes), jnp.float32),
        grid_spec=pltpu.PrefetchScalarGridSpec(
            num_scalar_prefetch=0,
            grid=(chunks, inner),
            in_specs=[
                pl.BlockSpec((tile_rows, lanes), in_map),
                pl.BlockSpec((tile_rows, lanes), in_map),
            ],
            out_specs=pl.BlockSpec((None, tile_rows, lanes),
                                   lambda c, j: (c, 0, 0)),
        ),
        compiler_params=pltpu.CompilerParams(
            dimension_semantics=("parallel", "arbitrary"),
        ),
    )(pred2d, true2d)


# ---------------------------------------------------------------------------
# Tiny (length-W) weight math — plain JAX
# ---------------------------------------------------------------------------
def _skewed_normal(x, mean, sd, alpha=-0.25):
    t = (x - mean) / sd
    pdf = jnp.exp(-0.5 * t * t) / jnp.float32(math.sqrt(2.0 * math.pi))
    cdf = 0.5 * (1.0 + jax.scipy.special.erf(alpha * t / jnp.float32(math.sqrt(2.0))))
    return 2.0 * pdf * cdf


def point_wise_mse_trainweighted_skewed_normal(pred, true, top_stats, bot_stats):
    """(mean(mse*top_coef) + mean(mse*bot_coef)) / 2 with skewed-normal weights."""
    # TODO(synk): in PyTorch the stats live in self.train_stats (a pandas
    # DataFrame, host-side state); here they are passed as explicit 1-D arrays
    # of length pred.shape[-1] (PyTorch broadcasting of the 1-D coef).
    assert pred.shape == true.shape
    w_dim = pred.shape[-1]
    assert top_stats.shape == (w_dim,) and bot_stats.shape == (w_dim,)

    n_elems = 1
    for s in pred.shape:
        n_elems *= s

    top_stats = top_stats.astype(jnp.float32)
    bot_stats = bot_stats.astype(jnp.float32)
    top_coef = _skewed_normal(top_stats, jnp.mean(top_stats), jnp.std(top_stats))
    bot_coef = _skewed_normal(bot_stats, jnp.mean(bot_stats), jnp.std(bot_stats))
    w_comb = 0.5 * (top_coef + bot_coef)                        # (W,)

    # Lane-dense layout when the last dim folds evenly into 128 lanes.
    if w_dim <= LANES and LANES % w_dim == 0 and n_elems % LANES == 0:
        lanes, fold = LANES, LANES // w_dim
    else:
        lanes, fold = w_dim, 1
    rows = n_elems // lanes
    pred2d = pred.reshape(rows, lanes)                          # free; keeps input dtype
    true2d = true.reshape(rows, lanes)

    bytes_per_row = lanes * 4
    t_cap = max(16, (MAX_TILE_BYTES // bytes_per_row) // 16 * 16)
    tile_rows = min(MAX_TILE_ROWS, t_cap, _round_up(rows, 16))

    partials = _sq_err_lane_partials(pred2d, true2d, tile_rows)  # (C, T, lanes)
    lane_sums = jnp.sum(partials, axis=(0, 1))                   # (lanes,)
    col_sums = lane_sums.reshape(fold, w_dim).sum(axis=0)        # (W,)

    loss = jnp.sum(col_sums * w_comb) / jnp.float32(n_elems)
    return loss.astype(jnp.float32)


def _reference(pred, true, top_stats, bot_stats):
    pred = pred.astype(jnp.float32)
    true = true.astype(jnp.float32)
    sq = (pred - true) ** 2
    top_coef = _skewed_normal(top_stats, jnp.mean(top_stats), jnp.std(top_stats))
    bot_coef = _skewed_normal(bot_stats, jnp.mean(bot_stats), jnp.std(bot_stats))
    return 0.5 * (jnp.mean(sq * top_coef) + jnp.mean(sq * bot_coef))


if __name__ == "__main__":
    key = jax.random.PRNGKey(0)
    k1, k2, k3, k4 = jax.random.split(key, 4)

    # Small NCHW-like prediction / target maps.
    x_shape = (2, 4, 16, 16)
    pred = jax.random.normal(k1, x_shape, dtype=jnp.float32)
    true = jax.random.normal(k2, x_shape, dtype=jnp.float32)
    # Per-last-dim training statistics (stand-in for train_stats['top'/'bot']).
    top_stats = jax.random.uniform(k3, (x_shape[-1],), dtype=jnp.float32,
                                   minval=0.0, maxval=10.0)
    bot_stats = jax.random.uniform(k4, (x_shape[-1],), dtype=jnp.float32,
                                   minval=0.0, maxval=10.0)

    loss_fn = jax.jit(point_wise_mse_trainweighted_skewed_normal)
    out = jax.block_until_ready(loss_fn(pred, true, top_stats, bot_stats))

    ref = _reference(pred, true, top_stats, bot_stats)
    assert jnp.allclose(out, ref, rtol=1e-4, atol=1e-7), (out, ref)

    print("KERNEL_OK")
</pallas_src>

<mosaic_0001>
module attributes {stable_mosaic.version = 11 : i64} {
  func.func @_sq_err_kernel(%arg0: i32, %arg1: i32, %arg2: memref<16x128xf32, #tpu.memory_space<vmem>>, %arg3: memref<16x128xf32, #tpu.memory_space<vmem>>, %arg4: memref<1x16x128xf32, #tpu.memory_space<vmem>>) attributes {dimension_semantics = [#tpu.dimension_semantics<parallel>, #tpu.dimension_semantics<arbitrary>], iteration_bounds = array<i64: 1, 1>, scalar_prefetch = 0 : i64, scratch_operands = 0 : i64, tpu.core_type = #tpu.core_type<tc>, window_params = [{transform_indices = @transform_0, window_bounds = array<i64: 16, 128>}, {transform_indices = @transform_1, window_bounds = array<i64: 16, 128>}, {transform_indices = @transform_2, window_bounds = array<i64: 1, 16, 128>}]} {
    %c0_i32 = arith.constant 0 : i32
    %0 = arith.cmpi eq, %arg1, %c0_i32 : i32
    %1 = arith.extui %0 : i1 to i32
    %c0_i32_0 = arith.constant 0 : i32
    %2 = arith.cmpi ne, %1, %c0_i32_0 : i32
    scf.if %2 {
      %cst_11 = arith.constant 0.000000e+00 : f32
      %23 = vector.broadcast %cst_11 : f32 to vector<16x128xf32>
      %c0_12 = arith.constant 0 : index
      %c0_13 = arith.constant 0 : index
      %c0_14 = arith.constant 0 : index
      %24 = vector.load %arg4[%c0_12, %c0_13, %c0_14] : memref<1x16x128xf32, #tpu.memory_space<vmem>>, vector<1x16x128xf32>
      %25 = vector.shape_cast %24 : vector<1x16x128xf32> to vector<16x128xf32>
      %26 = vector.shape_cast %23 : vector<16x128xf32> to vector<1x16x128xf32>
      tpu.vector_store %arg4[%c0_12, %c0_13, %c0_14], %26 {strides = array<i32>} : memref<1x16x128xf32, #tpu.memory_space<vmem>>, vector<1x16x128xf32>,
    } else {
    }
    %c1_i32 = arith.constant 1 : i32
    %3 = arith.muli %arg0, %c1_i32 : i32
    %4 = arith.addi %3, %arg1 : i32
    %c16_i32 = arith.constant 16 : i32
    %5 = arith.muli %4, %c16_i32 : i32
    %6 = tpu.iota {dimensions = array<i32: 0>} : vector<16x128xi32>
    %7 = vector.broadcast %5 : i32 to vector<16x128xi32>
    %8 = arith.addi %7, %6 : vector<16x128xi32>
    %c16_i32_1 = arith.constant 16 : i32
    %9 = vector.broadcast %c16_i32_1 : i32 to vector<16x128xi32>
    %10 = arith.cmpi slt, %8, %9 : vector<16x128xi32>
    %c0 = arith.constant 0 : index
    %c0_2 = arith.constant 0 : index
    %11 = vector.load %arg2[%c0, %c0_2] : memref<16x128xf32, #tpu.memory_space<vmem>>, vector<16x128xf32>
    %c0_3 = arith.constant 0 : index
    %c0_4 = arith.constant 0 : index
    %12 = vector.load %arg3[%c0_3, %c0_4] : memref<16x128xf32, #tpu.memory_space<vmem>>, vector<16x128xf32>
    %13 = arith.subf %11, %12 : vector<16x128xf32>
    %c0_5 = arith.constant 0 : index
    %c0_6 = arith.constant 0 : index
    %c0_7 = arith.constant 0 : index
    %14 = vector.load %arg4[%c0_5, %c0_6, %c0_7] : memref<1x16x128xf32, #tpu.memory_space<vmem>>, vector<1x16x128xf32>
    %15 = vector.shape_cast %14 : vector<1x16x128xf32> to vector<16x128xf32>
    %16 = arith.mulf %13, %13 : vector<16x128xf32>
    %cst = arith.constant 0.000000e+00 : f32
    %17 = vector.broadcast %cst : f32 to vector<16x128xf32>
    %18 = arith.select %10, %16, %17 : vector<16x128xi1>, vector<16x128xf32>
    %19 = arith.addf %15, %18 : vector<16x128xf32>
    %c0_8 = arith.constant 0 : index
    %c0_9 = arith.constant 0 : index
    %c0_10 = arith.constant 0 : index
    %20 = vector.load %arg4[%c0_8, %c0_9, %c0_10] : memref<1x16x128xf32, #tpu.memory_space<vmem>>, vector<1x16x128xf32>
    %21 = vector.shape_cast %20 : vector<1x16x128xf32> to vector<16x128xf32>
    %22 = vector.shape_cast %19 : vector<16x128xf32> to vector<1x16x128xf32>
    tpu.vector_store %arg4[%c0_8, %c0_9, %c0_10], %22 {strides = array<i32>} : memref<1x16x128xf32, #tpu.memory_space<vmem>>, vector<1x16x128xf32>,
    return
  }
  func.func @transform_0(%arg0: i32, %arg1: i32) -> (i32, i32) {
    %c1_i32 = arith.constant 1 : i32
    %0 = arith.muli %arg0, %c1_i32 : i32
    %1 = arith.addi %0, %arg1 : i32
    %c0_i32 = arith.constant 0 : i32
    %2 = arith.minsi %1, %c0_i32 : i32
    %c0_i32_0 = arith.constant 0 : i32
    %c0_i32_1 = arith.constant 0 : i32
    return %2, %c0_i32_0 : i32, i32
  }
  func.func @transform_1(%arg0: i32, %arg1: i32) -> (i32, i32) {
    %c1_i32 = arith.constant 1 : i32
    %0 = arith.muli %arg0, %c1_i32 : i32
    %1 = arith.addi %0, %arg1 : i32
    %c0_i32 = arith.constant 0 : i32
    %2 = arith.minsi %1, %c0_i32 : i32
    %c0_i32_0 = arith.constant 0 : i32
    %c0_i32_1 = arith.constant 0 : i32
    return %2, %c0_i32_0 : i32, i32
  }
  func.func @transform_2(%arg0: i32, %arg1: i32) -> (i32, i32, i32) {
    %c0_i32 = arith.constant 0 : i32
    %c0_i32_0 = arith.constant 0 : i32
    %c0_i32_1 = arith.constant 0 : i32
    return %arg0, %c0_i32, %c0_i32_0 : i32, i32, i32
  }
}

</mosaic_0001>

<bundles_post_ra>
// kernel: point_wise_mse_trainweighted_skewed_normal.1
= control target key start
LH: loop header
LB: loop body
LE: loop exit
PB: predicated region body
PF: predicated region fallthrough
CT: control target
= control target key end

     0   :  { %s157_s0 = inlined_call_operand.vmem [shape: f32[16,128], index: 0, kind: input, shape index: {}]   ;;  %s158_s1 = inlined_call_operand.vmem [shape: f32[16,128], index: 1, kind: input, shape index: {}]   ;;  %s159_s2 = inlined_call_operand.vmem [shape: f32[1,16,128], index: 2, kind: output, shape index: {}]  }
   0x1   :  { %v91_v0 = vld [vmem:[%s157_s0] sm:$0xff]  ;;  %v92_v2 = vld [vmem:[%s157_s0 + $0x8] sm:$0xff] }
   0x2   :  { %v93_v1 = vld [vmem:[%s158_s1] sm:$0xff]  ;;  %v94_v4 = vld [vmem:[%s158_s1 + $0x8] sm:$0xff] }
   0x3   :  { %v95_v3 = vsub.f32 %v91_v0, %v93_v1  ;;  %v96_v5 = vsub.f32 %v92_v2, %v94_v4 }
   0x5   :  { %v99_v6 = vmul.f32 %v95_v3, %v95_v3  ;;  %v100_v7 = vmul.f32 %v96_v5, %v96_v5 }
   0x7   :  { %105 = vst [vmem:[%s159_s2] sm:$0xff] %v99_v6  ;;  %106 = vst [vmem:[%s159_s2 + $0x8] sm:$0xff] %v100_v7 }

</bundles_post_ra>
